<compile_context>
chip_gen: v6e
topology: v6e:2x2x1
jax: 0.10.0
libtpu: 0.0.40
codegen_flags: <defaults>
</compile_context>

<pallas_src>
import jax
import jax.numpy as jnp
from jax import lax
from jax.experimental import pallas as pl
from jax.experimental.pallas import tpu as pltpu

EPS = 1e-12


# ---------------------------------------------------------------------------
# Kernels
# ---------------------------------------------------------------------------
def _cosine_similarity_kernel(x1_ref, x2_ref, out_ref):
    """Full-D path: one (bb, D) tile per grid step, no scratch needed."""
    x1 = x1_ref[...].astype(jnp.float32)
    x2 = x2_ref[...].astype(jnp.float32)

    dot = jnp.sum(x1 * x2, axis=-1, keepdims=True)  # (bb, 1) f32
    s1 = jnp.sum(x1 * x1, axis=-1, keepdims=True)
    s2 = jnp.sum(x2 * x2, axis=-1, keepdims=True)

    eps2 = jnp.float32(EPS * EPS)
    # max(||x||, eps) == sqrt(max(s, eps^2)); rsqrt runs on the EUP.
    inv = lax.rsqrt(jnp.maximum(s1, eps2)) * lax.rsqrt(jnp.maximum(s2, eps2))
    res = dot * inv  # (bb, 1)

    # Lane-dense store: per-row results presented along lanes as (1, bb).
    out_ref[...] = res.reshape(1, -1).astype(out_ref.dtype)


def _make_d_tiled_kernel(D, td, needs_mask):
    """Wide-D path: grid=(batch_blocks, d_blocks), f32 scratch accumulators."""

    def kernel(x1_ref, x2_ref, out_ref, dot_acc, s1_acc, s2_acc):
        k = pl.program_id(1)

        @pl.when(k == 0)
        def _init():
            dot_acc[...] = jnp.zeros_like(dot_acc)
            s1_acc[...] = jnp.zeros_like(s1_acc)
            s2_acc[...] = jnp.zeros_like(s2_acc)

        x1 = x1_ref[...].astype(jnp.float32)
        x2 = x2_ref[...].astype(jnp.float32)

        if needs_mask:
            # Partial last D block: zero out padded (garbage) columns.
            col = lax.broadcasted_iota(jnp.int32, x1.shape, 1) + k * td
            valid = col < D
            zero = jnp.float32(0.0)
            x1 = jnp.where(valid, x1, zero)
            x2 = jnp.where(valid, x2, zero)

        dot_acc[...] += jnp.sum(x1 * x2, axis=-1, keepdims=True)
        s1_acc[...] += jnp.sum(x1 * x1, axis=-1, keepdims=True)
        s2_acc[...] += jnp.sum(x2 * x2, axis=-1, keepdims=True)

        @pl.when(k == pl.num_programs(1) - 1)
        def _finalize():
            eps2 = jnp.float32(EPS * EPS)
            inv = lax.rsqrt(jnp.maximum(s1_acc[...], eps2)) * lax.rsqrt(
                jnp.maximum(s2_acc[...], eps2)
            )
            res = dot_acc[...] * inv  # (bb, 1)
            out_ref[...] = res.reshape(1, -1).astype(out_ref.dtype)

    return kernel


# ---------------------------------------------------------------------------
# Generation-aware sizing
# ---------------------------------------------------------------------------
def _vmem_budget():
    """Returns (per-input per-buffer tile byte target, vmem_limit_bytes)."""
    cap = 64 << 20  # conservative fallback (works on every generation)
    try:
        info = pltpu.get_tpu_info()
        cap = int(getattr(info, "vmem_capacity_bytes", cap))
    except Exception:
        pass
    # v5e/v6e (128 MiB physical) -> 64 MiB limit; v7x (64 MiB) -> 32 MiB limit.
    vmem_limit = min(cap // 2, 64 << 20)
    # 2 inputs x 2 buffers x tile must leave headroom for outputs + scratch.
    tile_target = min(4 << 20, vmem_limit // 8)
    return tile_target, vmem_limit


def _default_block_batch(B, D, itemsize, tile_target):
    rows = tile_target // max(1, D * itemsize)
    rows = max(128, (rows // 128) * 128)
    if rows >= B:
        if B >= 256:
            # Keep >= 2 grid steps so both v7x TensorCores get work.
            rows = max(128, (((B + 1) // 2) // 128) * 128)
        else:
            rows = B  # single full-extent block: always layout-legal
    return rows


# ---------------------------------------------------------------------------
# Wrapper
# ---------------------------------------------------------------------------
def cosine_similarity(
    x1: jax.Array,
    x2: jax.Array,
    *,
    block_batch: int | None = None,
    block_d: int | None = None,
):
    """Batchwise cosine similarity along the last axis of 2-D inputs."""
    assert x1.shape == x2.shape, "x1 and x2 must have the same shape"
    assert x1.ndim == 2, "this kernel handles (batch, size) inputs"
    B, D = x1.shape

    out_dtype = jnp.result_type(x1.dtype, x2.dtype)
    itemsize = max(jnp.dtype(x1.dtype).itemsize, jnp.dtype(x2.dtype).itemsize)
    tile_target, vmem_limit = _vmem_budget()

    cost = pl.CostEstimate(
        flops=6 * B * D,
        transcendentals=2 * B,
        bytes_accessed=2 * B * D * itemsize + B * jnp.dtype(out_dtype).itemsize,
    )

    # Decide between the full-D path and the D-tiled (wide-D) path.
    smallest_full_d_tile = 128 * D * itemsize
    use_d_tiling = block_d is not None or smallest_full_d_tile > tile_target

    if not use_d_tiling:
        bb = (
            block_batch
            if block_batch is not None
            else _default_block_batch(B, D, itemsize, tile_target)
        )
        if bb >= B:
            bb = B
        else:
            assert bb % 128 == 0, "block_batch must be a multiple of 128 (or >= batch)"

        grid = (pl.cdiv(B, bb),)
        in_spec = pl.BlockSpec((bb, D), lambda i: (i, 0))
        out_spec = pl.BlockSpec((1, bb), lambda i: (0, i))
        kernel = _cosine_similarity_kernel
        scratch = []
        dims = ("parallel",)
    else:
        # Batch tile: moderate, keeps scratch small and grid parallel-friendly.
        if block_batch is not None:
            bb = min(block_batch, B)
            assert bb == B or bb % 128 == 0, (
                "block_batch must be a multiple of 128 (or >= batch)"
            )
        elif B <= 128:
            bb = B
        elif B < 512:
            bb = 128
        else:
            bb = 256

        if block_d is not None:
            td = block_d
            assert td == D or td % 128 == 0, (
                "block_d must be a multiple of 128 (or equal to size)"
            )
        else:
            td = max(128, (tile_target // max(1, bb * itemsize)) // 128 * 128)
        if td >= D:
            td = D  # degenerates to the accumulate-once case; still correct

        needs_mask = (D % td) != 0
        grid = (pl.cdiv(B, bb), pl.cdiv(D, td))
        in_spec = pl.BlockSpec((bb, td), lambda i, k: (i, k))
        out_spec = pl.BlockSpec((1, bb), lambda i, k: (0, i))
        kernel = _make_d_tiled_kernel(D, td, needs_mask)
        scratch = [pltpu.VMEM((bb, 1), jnp.float32)] * 3
        dims = ("parallel", "arbitrary")

    out = pl.pallas_call(
        kernel,
        out_shape=jax.ShapeDtypeStruct((1, B), out_dtype),
        grid_spec=pltpu.PrefetchScalarGridSpec(
            num_scalar_prefetch=0,
            grid=grid,
            in_specs=[in_spec, in_spec],
            out_specs=out_spec,
            scratch_shapes=scratch,
        ),
        compiler_params=pltpu.CompilerParams(
            dimension_semantics=dims,
            vmem_limit_bytes=vmem_limit,
        ),
        cost_estimate=cost,
    )(x1, x2)

    return out[0]  # (B,), matching PyTorch's F.cosine_similarity output


# ---------------------------------------------------------------------------
# Reference + tests
# ---------------------------------------------------------------------------
def _reference(x1, x2):
    x1 = x1.astype(jnp.float32)
    x2 = x2.astype(jnp.float32)
    dot = jnp.sum(x1 * x2, axis=-1)
    n1 = jnp.maximum(jnp.linalg.norm(x1, axis=-1), EPS)
    n2 = jnp.maximum(jnp.linalg.norm(x2, axis=-1), EPS)
    return dot / (n1 * n2)


if __name__ == "__main__":
    key = jax.random.PRNGKey(0)
    keys = jax.random.split(key, 8)

    # 1) Tiny single-block, full-D path (module-scale inputs).
    batch, size = 8, 32
    x1 = jax.random.normal(keys[0], (batch, size), dtype=jnp.float32)
    x2 = jax.random.normal(keys[1], (batch, size), dtype=jnp.float32)
    r1 = cosine_similarity(x1, x2)
    jax.block_until_ready(r1)
    assert r1.shape == (batch,)
    assert jnp.allclose(r1, _reference(x1, x2), atol=1e-6, rtol=1e-5)

    # 2) Multi-block batch path: lane-dense output tiles + masked partial
    #    last batch block.
    batch2, size2 = 300, 256
    y1 = jax.random.normal(keys[2], (batch2, size2), dtype=jnp.float32)
    y2 = jax.random.normal(keys[3], (batch2, size2), dtype=jnp.float32)
    r2 = cosine_similarity(y1, y2, block_batch=128)
    jax.block_until_ready(r2)
    assert r2.shape == (batch2,)
    assert jnp.allclose(r2, _reference(y1, y2), atol=1e-6, rtol=1e-5)

    # 3) D-tiled path (forced small): exact D multiple, scratch accumulators.
    batch3, size3 = 48, 384
    z1 = jax.random.normal(keys[4], (batch3, size3), dtype=jnp.float32)
    z2 = jax.random.normal(keys[5], (batch3, size3), dtype=jnp.float32)
    r3 = cosine_similarity(z1, z2, block_d=128)
    jax.block_until_ready(r3)
    assert r3.shape == (batch3,)
    assert jnp.allclose(r3, _reference(z1, z2), atol=1e-6, rtol=1e-5)

    # 4) D-tiled path with a partial (masked) last D block + bf16 inputs,
    #    exercising the f32 upcast-before-multiply path.
    batch4, size4 = 64, 400
    w1 = jax.random.normal(keys[6], (batch4, size4), dtype=jnp.bfloat16)
    w2 = jax.random.normal(keys[7], (batch4, size4), dtype=jnp.bfloat16)
    r4 = cosine_similarity(w1, w2, block_d=128)
    jax.block_until_ready(r4)
    assert r4.shape == (batch4,)
    assert jnp.allclose(
        r4.astype(jnp.float32), _reference(w1, w2), atol=2e-2, rtol=2e-2
    )

    print("KERNEL_OK")
</pallas_src>

<mosaic_0001>
module attributes {stable_mosaic.version = 11 : i64} {
  func.func @_cosine_similarity_kernel(%arg0: i32, %arg1: memref<8x32xf32, #tpu.memory_space<vmem>>, %arg2: memref<8x32xf32, #tpu.memory_space<vmem>>, %arg3: memref<1x8xf32, #tpu.memory_space<vmem>>) attributes {dimension_semantics = [#tpu.dimension_semantics<parallel>], iteration_bounds = array<i64: 1>, scalar_prefetch = 0 : i64, scratch_operands = 0 : i64, tpu.core_type = #tpu.core_type<tc>, window_params = [{transform_indices = @transform_0, window_bounds = array<i64: 8, 32>}, {transform_indices = @transform_1, window_bounds = array<i64: 8, 32>}, {transform_indices = @transform_2, window_bounds = array<i64: 1, 8>}]} {
    %c0 = arith.constant 0 : index
    %c0_0 = arith.constant 0 : index
    %0 = vector.load %arg1[%c0, %c0_0] : memref<8x32xf32, #tpu.memory_space<vmem>>, vector<8x32xf32>
    %c0_1 = arith.constant 0 : index
    %c0_2 = arith.constant 0 : index
    %1 = vector.load %arg2[%c0_1, %c0_2] : memref<8x32xf32, #tpu.memory_space<vmem>>, vector<8x32xf32>
    %2 = arith.mulf %0, %1 : vector<8x32xf32>
    %cst = arith.constant dense<0.000000e+00> : vector<8xf32>
    %3 = vector.multi_reduction <add>, %2, %cst [1] : vector<8x32xf32> to vector<8xf32>
    %4 = vector.shape_cast %3 : vector<8xf32> to vector<8x1xf32>
    %5 = arith.mulf %0, %0 : vector<8x32xf32>
    %cst_3 = arith.constant dense<0.000000e+00> : vector<8xf32>
    %6 = vector.multi_reduction <add>, %5, %cst_3 [1] : vector<8x32xf32> to vector<8xf32>
    %7 = vector.shape_cast %6 : vector<8xf32> to vector<8x1xf32>
    %8 = arith.mulf %1, %1 : vector<8x32xf32>
    %cst_4 = arith.constant dense<0.000000e+00> : vector<8xf32>
    %9 = vector.multi_reduction <add>, %8, %cst_4 [1] : vector<8x32xf32> to vector<8xf32>
    %10 = vector.shape_cast %9 : vector<8xf32> to vector<8x1xf32>
    %cst_5 = arith.constant 1.000000e-24 : f32
    %11 = vector.broadcast %cst_5 : f32 to vector<8x1xf32>
    %12 = arith.maximumf %7, %11 : vector<8x1xf32>
    %13 = math.rsqrt %12 : vector<8x1xf32>
    %cst_6 = arith.constant 1.000000e-24 : f32
    %14 = vector.broadcast %cst_6 : f32 to vector<8x1xf32>
    %15 = arith.maximumf %10, %14 : vector<8x1xf32>
    %16 = math.rsqrt %15 : vector<8x1xf32>
    %17 = arith.mulf %13, %16 : vector<8x1xf32>
    %18 = arith.mulf %4, %17 : vector<8x1xf32>
    %19 = vector.shape_cast %18 : vector<8x1xf32> to vector<1x8xf32>
    %c0_7 = arith.constant 0 : index
    %c0_8 = arith.constant 0 : index
    %20 = vector.load %arg3[%c0_7, %c0_8] : memref<1x8xf32, #tpu.memory_space<vmem>>, vector<1x8xf32>
    tpu.vector_store %arg3[%c0_7, %c0_8], %19 {strides = array<i32>} : memref<1x8xf32, #tpu.memory_space<vmem>>, vector<1x8xf32>,
    return
  }
  func.func @transform_0(%arg0: i32) -> (i32, i32) {
    %c0_i32 = arith.constant 0 : i32
    %c0_i32_0 = arith.constant 0 : i32
    return %arg0, %c0_i32 : i32, i32
  }
  func.func @transform_1(%arg0: i32) -> (i32, i32) {
    %c0_i32 = arith.constant 0 : i32
    %c0_i32_0 = arith.constant 0 : i32
    return %arg0, %c0_i32 : i32, i32
  }
  func.func @transform_2(%arg0: i32) -> (i32, i32) {
    %c0_i32 = arith.constant 0 : i32
    %c0_i32_0 = arith.constant 0 : i32
    return %c0_i32, %arg0 : i32, i32
  }
}

</mosaic_0001>

<bundles_post_ra>
// kernel: tpu_custom_call.1
= control target key start
LH: loop header
LB: loop body
LE: loop exit
PB: predicated region body
PF: predicated region fallthrough
CT: control target
= control target key end

     0   :  { %7 = vsyncpa [#allocation3], 0  ;;  %s183_s0 = inlined_call_operand.hbm [shape: f32[8,32], index: 0, kind: input, shape index: {}]   ;;  %s184_s1 = inlined_call_operand.hbm [shape: f32[8,32], index: 1, kind: input, shape index: {}]   ;;  %s185_s2 = inlined_call_operand.hbm [shape: f32[1,8], index: 2, kind: output, shape index: {}]  }
   0x1   :  { %8 = vsyncpa [#allocation6], 0 }
   0x2   :  { %9 = vsyncpa [#allocation4], 0  ;;  %s156_s9 = smov [#allocation2]   ;;  %s157_s11 = smov [#allocation5]  }
   0x3   :  { %s16_s10 = sshll.u32 %s156_s9, 4  ;;  %s26_s12 = sshll.u32 %s157_s11, 4  ;;  %s17_s10 = int_to_ptr.vmem [resolvable:$true] %s16_s10  ;;  %s27_s12 = int_to_ptr.vmem [resolvable:$true] %s26_s12 }
   0x4   :  { %s98_s13 = scalar_lea.vmem %s17_s10, 128  ;;  %p103_p1 = scmp.lt.s32.totalorder %s17_s10, %s17_s10 }
   0x5   :  { %p99_p0 = scmp.ne.s32.totalorder %s17_s10, %s98_s13  ;;  %p104_p2 = scmp.lt.s32.totalorder %s98_s13, %s98_s13 }
   0x7   :  { %p105_p3 = por %p104_p2, %p103_p1 }
   0x9   :  { %p106_p4 = pnand %p105_p3, %p99_p0 }
   0xb   :  { %109 = shalt.err (!%p106_p4)
}
   0xc   :  { %19 = dma.hbm_to_vmem [thread:$0]  %s183_s0, 128, %s17_s10, [#allocation3]  }
   0xd   :  { %s118_s16 = scalar_lea.vmem %s27_s12, 128  ;;  %p123_p6 = scmp.lt.s32.totalorder %s27_s12, %s27_s12 }
   0xe   :  { %p119_p5 = scmp.ne.s32.totalorder %s27_s12, %s118_s16  ;;  %p124_p7 = scmp.lt.s32.totalorder %s118_s16, %s118_s16 }
  0x10   :  { %p125_p8 = por %p124_p7, %p123_p6 }
  0x12   :  { %p126_p9 = pnand %p125_p8, %p119_p5 }
  0x14   :  { %129 = shalt.err (!%p126_p9)
}
  0x15   :  { %29 = dma.hbm_to_vmem [thread:$0]  %s184_s1, 128, %s27_s12, [#allocation6]  }
  0x16   :  { %150 = dma.done.wait [#allocation3], 128  }
  0x17   :  { %151 = vsyncadd [#allocation3], 4294967168 }
  0x18   :  { %152 = dma.done.wait [#allocation6], 128  }
  0x19   :  { %153 = vsyncadd [#allocation6], 4294967168  ;;  %v36_v0 = vld [vmem:[#allocation2] sm:$0xff]  ;;  %vm39_vm0 = vcmask 261120   ;;  %v37_v1 = vld [vmem:[#allocation5] sm:$0xff]  ;;  %v58_v12 = vlaneseq  ;;  %s158_s0 = smov [#allocation7]  }
  0x1a   :  { %v43_v2 = vmul.f32 %v36_v0, %v36_v0  ;;  %v47_v3 = vmul.f32 %v37_v1, %v37_v1  ;;  %v38_v4 = vmul.f32 %v37_v1, %v36_v0  ;;  %s73_s1 = sshll.u32 %s158_s0, 4  ;;  %vm65_vm1 = vcmask 57344   ;;  %s74_s1 = int_to_ptr.vmem [resolvable:$true] %s73_s1 }
  0x1b   :  { %v59_v13 = vand.u32 127, %v58_v12  ;;  %v61_v14 = vshrl.u32 %v58_v12, 7  ;;  %s130_s19 = scalar_lea.vmem %s74_s1, 16  ;;  %s134_s20 = scalar_lea.vmem %s74_s1, 32 }
  0x1c   :  { %v44_v5 = vsel %vm39_vm0, %v43_v2, 0.0  ;;  %v40_v6 = vsel %vm39_vm0, %v38_v4, 0.0  ;;  %v48_v7 = vsel %vm39_vm0, %v47_v3, 0.0  ;;  %p131_p10 = scmp.ne.s32.totalorder %s74_s1, %s130_s19  ;;  %p135_p11 = scmp.lt.s32.totalorder %s74_s1, %s74_s1 }
  0x1d   :  { %45 = vadd.xlane.f32.xlu0 %v44_v5  ;;  %41 = vadd.xlane.f32.xlu1 %v40_v6  ;;  %v62_v19 = vsub.s32 %v59_v13, %v61_v14  ;;  %p136_p12 = scmp.lt.s32.totalorder %s134_s20, %s130_s19 }
  0x1f   :  { %p137_p13 = por %p136_p12, %p135_p11 }
  0x21   :  { %49 = vadd.xlane.f32.xlu0 %v48_v7  ;;  %p138_p0 = pnand %p137_p13, %p131_p10 }
  0xa6   :  { %v46_v8 = vpop.xlane.xlu0 %45  ;;  %v42_v17 = vpop.xlane.xlu1 %41 }
  0xa7   :  { %v51_v9 = vmax.f32 %v46_v8, 1e-24 }
  0xa9   :  { %86 = vrsqrt.f32 %v51_v9 }
  0xaa   :  { %v50_v10 = vpop.xlane.xlu0 %49 }
  0xab   :  { %v53_v11 = vmax.f32 %v50_v10, 1e-24 }
  0xad   :  { %88 = vrsqrt.f32 %v53_v11 }
  0xb6   :  { %v87_v15 = vpop.eup %86 }
  0xba   :  { %v89_v16 = vpop.eup %88 }
  0xbb   :  { %v55_v18 = vmul.f32 %v89_v16, %v87_v15 }
  0xbd   :  { %v56_v20 = vmul.f32 %v55_v18, %v42_v17 }
  0xbf   :  { %v63_v21 = vrot.slane %v56_v20, %v62_v19 }
  0xc1   :  { %66 = vst.msk [vmem:[#allocation7] sm:$0x1] %vm65_vm1, %v63_v21 }
  0xc2   :  { %141 = shalt.err (!%p138_p0)
}
  0xc3   :  { %76 = dma.vmem_to_hbm [thread:$0]  %s74_s1, 16, %s185_s2, [#allocation4]  }
  0xc4   :  { %154 = dma.done.wait [#allocation4], 16  }
  0xc5   :  { %155 = vsyncadd [#allocation4], 4294967280 }
  0xc6   :  { %80 = vsyncpa [#allocation3], 1 }
  0xc7   :  { %81 = vsyncpa [#allocation6], 1 }
  0xc8   :  { %82 = vsyncpa [#allocation4], 1 }

</bundles_post_ra>
